<compile_context>
chip_gen: v6e
topology: v6e:2x2x1
jax: 0.10.0
libtpu: 0.0.40
codegen_flags: <defaults>
</compile_context>

<pallas_src>
import math

import jax
import jax.numpy as jnp
from jax.experimental import pallas as pl
from jax.experimental.pallas import tpu as pltpu

HIDDEN = 128
OUT_PAD = 128  # lane-dense padded output width (real output_size sliced in wrapper)


def _dqn_mlp_kernel(x_ref, w1_ref, w2_ref, w3_ref, b_ref, o_ref):
    # Biases are packed as rows of a single [3, 128] f32 array.
    b1 = b_ref[0:1, :]
    b2 = b_ref[1:2, :]
    b3 = b_ref[2:3, :]

    x = x_ref[...]

    # fc1 + relu  (bf16 inputs to the MXU, f32 accumulate, f32 elementwise)
    h1 = jnp.dot(x.astype(jnp.bfloat16), w1_ref[...],
                 preferred_element_type=jnp.float32)
    h1 = jnp.maximum(h1 + b1, 0.0)

    # fc2 + relu
    h2 = jnp.dot(h1.astype(jnp.bfloat16), w2_ref[...],
                 preferred_element_type=jnp.float32)
    h2 = jnp.maximum(h2 + b2, 0.0)

    # fc3 (no activation), output padded to 128 lanes
    out = jnp.dot(h2.astype(jnp.bfloat16), w3_ref[...],
                  preferred_element_type=jnp.float32) + b3
    o_ref[...] = out.astype(o_ref.dtype)


def dqn_forward(state, params):
    """Pallas equivalent of DQN.forward.

    state: [B, input_size] float32 (or None / empty -> zeros(output_size),
           matching the PyTorch module's early-exit).
    params: dict from init_dqn_params (bf16 weights [in,out], packed f32 bias,
            python-int 'out_size').
    """
    out_size = params["out_size"]
    if state is None or state.size == 0:
        return jnp.zeros((out_size,), dtype=jnp.float32)

    B, F = state.shape
    vmem_spec = pl.BlockSpec(memory_space=pltpu.MemorySpace.VMEM)

    flops = 2 * B * (F * HIDDEN + HIDDEN * HIDDEN + HIDDEN * OUT_PAD)
    bytes_accessed = (
        B * F * 4                      # state (f32)
        + F * HIDDEN * 2               # w1 (bf16)
        + HIDDEN * HIDDEN * 2          # w2 (bf16)
        + HIDDEN * OUT_PAD * 2         # w3 (bf16, padded)
        + 3 * OUT_PAD * 4              # packed biases (f32)
        + B * OUT_PAD * 4              # padded output (f32)
    )

    out_padded = pl.pallas_call(
        _dqn_mlp_kernel,
        out_shape=jax.ShapeDtypeStruct((B, OUT_PAD), jnp.float32),
        in_specs=[vmem_spec] * 5,
        out_specs=vmem_spec,
        cost_estimate=pl.CostEstimate(
            flops=flops, transcendentals=0, bytes_accessed=bytes_accessed),
    )(state, params["w1"], params["w2"], params["w3"], params["b"])

    # Slice back to the real action dimension so downstream argmax over
    # available actions never sees the zero-padded lanes.
    return out_padded[:, :out_size]


def init_dqn_params(key, input_size, output_size):
    """Deterministic init mimicking PyTorch nn.Linear default U(-1/sqrt(fan_in), +).

    Weights are stored [in, out] in bf16 (DMA/MXU friendly); biases are kept
    f32 and packed into a single [3, 128] array; fc3 weight/bias are
    zero-padded to 128 output lanes.
    """
    def linear(k, fan_in, fan_out):
        kw, kb = jax.random.split(k)
        bound = 1.0 / math.sqrt(fan_in)
        w = jax.random.uniform(kw, (fan_in, fan_out), jnp.float32, -bound, bound)
        b = jax.random.uniform(kb, (fan_out,), jnp.float32, -bound, bound)
        return w, b

    k1, k2, k3 = jax.random.split(key, 3)
    w1, b1 = linear(k1, input_size, HIDDEN)
    w2, b2 = linear(k2, HIDDEN, HIDDEN)
    w3, b3 = linear(k3, HIDDEN, output_size)

    # Pad fc3 to lane-dense width.
    w3_p = jnp.zeros((HIDDEN, OUT_PAD), jnp.float32).at[:, :output_size].set(w3)
    b3_p = jnp.zeros((OUT_PAD,), jnp.float32).at[:output_size].set(b3)

    # Pack biases into one [3, 128] f32 array (b1, b2, padded b3).
    b_packed = jnp.stack([b1, b2, b3_p], axis=0)

    return {
        "w1": w1.astype(jnp.bfloat16),
        "w2": w2.astype(jnp.bfloat16),
        "w3": w3_p.astype(jnp.bfloat16),
        "b": b_packed,
        "out_size": output_size,
    }


def _ref_forward(state, params):
    """Pure-JAX reference with identical dtypes / math (no Pallas)."""
    b = params["b"]
    h1 = jnp.maximum(
        jnp.dot(state.astype(jnp.bfloat16), params["w1"],
                preferred_element_type=jnp.float32) + b[0:1], 0.0)
    h2 = jnp.maximum(
        jnp.dot(h1.astype(jnp.bfloat16), params["w2"],
                preferred_element_type=jnp.float32) + b[1:2], 0.0)
    out = jnp.dot(h2.astype(jnp.bfloat16), params["w3"],
                  preferred_element_type=jnp.float32) + b[2:3]
    return out[:, :params["out_size"]]


# TODO(synk): chooseAction / replay buffer / Adam training step are host-side
# RL plumbing with no Pallas equivalent; only forward() is implemented here.

if __name__ == "__main__":
    # Small shapes consistent with the module: the game state vector is ~30
    # features, the action space is 21 (getAvailableActions builds 21 slots).
    batch = 8
    input_size = 30
    output_size = 21

    key = jax.random.PRNGKey(0)
    pkey, xkey = jax.random.split(key)
    params = init_dqn_params(pkey, input_size, output_size)
    state = jax.random.normal(xkey, (batch, input_size), dtype=jnp.float32)

    q_values = jax.block_until_ready(dqn_forward(state, params))
    assert q_values.shape == (batch, output_size)

    ref = jax.block_until_ready(_ref_forward(state, params))
    assert jnp.allclose(q_values, ref, atol=2e-2, rtol=2e-2), (
        jnp.max(jnp.abs(q_values - ref)))

    # None / empty-state path (returns zeros(output_size) like the PyTorch module).
    empty_out = jax.block_until_ready(dqn_forward(None, params))
    assert empty_out.shape == (output_size,)
    assert bool(jnp.all(empty_out == 0.0))

    print("KERNEL_OK")
</pallas_src>

<mosaic_0001>
module attributes {stable_mosaic.version = 11 : i64} {
  func.func @_dqn_mlp_kernel(%arg0: memref<8x30xf32, #tpu.memory_space<vmem>>, %arg1: memref<30x128xbf16, #tpu.memory_space<vmem>>, %arg2: memref<128x128xbf16, #tpu.memory_space<vmem>>, %arg3: memref<128x128xbf16, #tpu.memory_space<vmem>>, %arg4: memref<3x128xf32, #tpu.memory_space<vmem>>, %arg5: memref<8x128xf32, #tpu.memory_space<vmem>>) attributes {dimension_semantics = [], scalar_prefetch = 0 : i64, scratch_operands = 0 : i64, tpu.core_type = #tpu.core_type<tc>} {
    %c0 = arith.constant 0 : index
    %c0_0 = arith.constant 0 : index
    %0 = vector.load %arg4[%c0, %c0_0] : memref<3x128xf32, #tpu.memory_space<vmem>>, vector<1x128xf32>
    %c1 = arith.constant 1 : index
    %c0_1 = arith.constant 0 : index
    %1 = vector.load %arg4[%c1, %c0_1] : memref<3x128xf32, #tpu.memory_space<vmem>>, vector<1x128xf32>
    %c2 = arith.constant 2 : index
    %c0_2 = arith.constant 0 : index
    %2 = vector.load %arg4[%c2, %c0_2] : memref<3x128xf32, #tpu.memory_space<vmem>>, vector<1x128xf32>
    %c0_3 = arith.constant 0 : index
    %c0_4 = arith.constant 0 : index
    %3 = vector.load %arg0[%c0_3, %c0_4] : memref<8x30xf32, #tpu.memory_space<vmem>>, vector<8x30xf32>
    %4 = arith.truncf %3 : vector<8x30xf32> to vector<8x30xbf16>
    %c0_5 = arith.constant 0 : index
    %c0_6 = arith.constant 0 : index
    %5 = vector.load %arg1[%c0_5, %c0_6] : memref<30x128xbf16, #tpu.memory_space<vmem>>, vector<30x128xbf16>
    %cst = arith.constant dense<0.000000e+00> : vector<8x128xf32>
    %6 = tpu.matmul %4, %5, %cst {dimension_numbers = #tpu.dot_dimension_numbers<[1], [0], [0], [1], [0, 0, 1, 1], [], []>} : vector<8x30xbf16>, vector<30x128xbf16>, vector<8x128xf32> -> vector<8x128xf32>
    %7 = vector.broadcast %0 : vector<1x128xf32> to vector<8x128xf32>
    %8 = arith.addf %6, %7 : vector<8x128xf32>
    %cst_7 = arith.constant 0.000000e+00 : f32
    %9 = vector.broadcast %cst_7 : f32 to vector<8x128xf32>
    %10 = arith.maximumf %8, %9 : vector<8x128xf32>
    %11 = arith.truncf %10 : vector<8x128xf32> to vector<8x128xbf16>
    %c0_8 = arith.constant 0 : index
    %c0_9 = arith.constant 0 : index
    %12 = vector.load %arg2[%c0_8, %c0_9] : memref<128x128xbf16, #tpu.memory_space<vmem>>, vector<128x128xbf16>
    %cst_10 = arith.constant dense<0.000000e+00> : vector<8x128xf32>
    %13 = tpu.matmul %11, %12, %cst_10 {dimension_numbers = #tpu.dot_dimension_numbers<[1], [0], [0], [1], [0, 0, 1, 1], [], []>} : vector<8x128xbf16>, vector<128x128xbf16>, vector<8x128xf32> -> vector<8x128xf32>
    %14 = vector.broadcast %1 : vector<1x128xf32> to vector<8x128xf32>
    %15 = arith.addf %13, %14 : vector<8x128xf32>
    %cst_11 = arith.constant 0.000000e+00 : f32
    %16 = vector.broadcast %cst_11 : f32 to vector<8x128xf32>
    %17 = arith.maximumf %15, %16 : vector<8x128xf32>
    %18 = arith.truncf %17 : vector<8x128xf32> to vector<8x128xbf16>
    %c0_12 = arith.constant 0 : index
    %c0_13 = arith.constant 0 : index
    %19 = vector.load %arg3[%c0_12, %c0_13] : memref<128x128xbf16, #tpu.memory_space<vmem>>, vector<128x128xbf16>
    %cst_14 = arith.constant dense<0.000000e+00> : vector<8x128xf32>
    %20 = tpu.matmul %18, %19, %cst_14 {dimension_numbers = #tpu.dot_dimension_numbers<[1], [0], [0], [1], [0, 0, 1, 1], [], []>} : vector<8x128xbf16>, vector<128x128xbf16>, vector<8x128xf32> -> vector<8x128xf32>
    %21 = vector.broadcast %2 : vector<1x128xf32> to vector<8x128xf32>
    %22 = arith.addf %20, %21 : vector<8x128xf32>
    %c0_15 = arith.constant 0 : index
    %c0_16 = arith.constant 0 : index
    %23 = vector.load %arg5[%c0_15, %c0_16] : memref<8x128xf32, #tpu.memory_space<vmem>>, vector<8x128xf32>
    tpu.vector_store %arg5[%c0_15, %c0_16], %22 {strides = array<i32>} : memref<8x128xf32, #tpu.memory_space<vmem>>, vector<8x128xf32>,
    return
  }
}

</mosaic_0001>

<bundles_post_ra>
// kernel: tpu_custom_call.1
= control target key start
LH: loop header
LB: loop body
LE: loop exit
PB: predicated region body
PF: predicated region fallthrough
CT: control target
= control target key end

     0   :  { %10 = vsyncpa [#allocation3], 0  ;;  %s707_s0 = inlined_call_operand.hbm [shape: f32[8,30], index: 0, kind: input, shape index: {}]   ;;  %s708_s1 = inlined_call_operand.hbm [shape: bf16[30,128], index: 1, kind: input, shape index: {}]   ;;  %s709_s2 = inlined_call_operand.hbm [shape: bf16[128,128], index: 2, kind: input, shape index: {}]   ;;  %s710_s3 = inlined_call_operand.hbm [shape: bf16[128,128], index: 3, kind: input, shape index: {}]   ;;  %s711_s4 = inlined_call_operand.vmem [shape: f32[3,128], index: 4, kind: input, shape index: {}]   ;;  %s712_s5 = inlined_call_operand.hbm [shape: f32[8,128], index: 5, kind: output, shape index: {}]  }
   0x1   :  { %11 = vsyncpa [#allocation6], 0 }
   0x2   :  { %12 = vsyncpa [#allocation9], 0 }
   0x3   :  { %13 = vsyncpa [#allocation4], 0  ;;  %s611_s18 = smov [#allocation5]  }
   0x4   :  { %s29_s19 = sshll.u32 %s611_s18, 4  ;;  %s30_s19 = int_to_ptr.vmem [resolvable:$true] %s29_s19 }
   0x5   :  { %s511_s20 = scalar_lea.vmem %s30_s19, 256  ;;  %p516_p1 = scmp.lt.s32.totalorder %s30_s19, %s30_s19 }
   0x6   :  { %p512_p0 = scmp.ne.s32.totalorder %s30_s19, %s511_s20  ;;  %p517_p2 = scmp.lt.s32.totalorder %s511_s20, %s511_s20 }
   0x8   :  { %p518_p3 = por %p517_p2, %p516_p1 }
   0xa   :  { %p519_p4 = pnand %p518_p3, %p512_p0 }
   0xc   :  { %522 = shalt.err (!%p519_p4)
}
   0xd   :  { %s612_s21 = smov 64   ;;  %s613_s22 = smov 4  }
   0xe   :  { %35 = dma.hbm_to_vmem [thread:$0]  %s708_s1, 256, %s30_s19, [#allocation6], %s612_s21, %s612_s21, %s613_s22  }
   0xf   :  { %s614_s25 = smov [#allocation2]   ;;  %s615_s27 = smov [#allocation7]  }
  0x10   :  { %s20_s26 = sshll.u32 %s614_s25, 4  ;;  %s41_s28 = sshll.u32 %s615_s27, 4  ;;  %s21_s26 = int_to_ptr.vmem [resolvable:$true] %s20_s26  ;;  %s42_s28 = int_to_ptr.vmem [resolvable:$true] %s41_s28 }
  0x11   :  { %s531_s29 = scalar_lea.vmem %s21_s26, 128  ;;  %p536_p6 = scmp.lt.s32.totalorder %s21_s26, %s21_s26 }
  0x12   :  { %p532_p5 = scmp.ne.s32.totalorder %s21_s26, %s531_s29  ;;  %p537_p7 = scmp.lt.s32.totalorder %s531_s29, %s531_s29 }
  0x14   :  { %p538_p8 = por %p537_p7, %p536_p6 }
  0x16   :  { %p539_p9 = pnand %p538_p8, %p532_p5 }
  0x18   :  { %542 = shalt.err (!%p539_p9)
}
  0x19   :  { %23 = dma.hbm_to_vmem [thread:$0]  %s707_s0, 128, %s21_s26, [#allocation3]  }
  0x1a   :  { %s551_s7 = scalar_lea.vmem %s42_s28, 1024  ;;  %p556_p11 = scmp.lt.s32.totalorder %s42_s28, %s42_s28 }
  0x1b   :  { %p552_p10 = scmp.ne.s32.totalorder %s42_s28, %s551_s7  ;;  %p557_p12 = scmp.lt.s32.totalorder %s551_s7, %s551_s7 }
  0x1d   :  { %p558_p13 = por %p557_p12, %p556_p11 }
  0x1f   :  { %p559_p0 = pnand %p558_p13, %p552_p10 }
  0x21   :  { %562 = shalt.err (!%p559_p0)
}
  0x22   :  { %47 = dma.hbm_to_vmem [thread:$0]  %s709_s2, 1024, %s42_s28, [#allocation6], %s612_s21, %s612_s21, %s613_s22  }
  0x23   :  { %s616_s9 = smov [#allocation8]  }
  0x24   :  { %s53_s10 = sshll.u32 %s616_s9, 4  ;;  %s54_s10 = int_to_ptr.vmem [resolvable:$true] %s53_s10 }
  0x25   :  { %s571_s11 = scalar_lea.vmem %s54_s10, 1024  ;;  %p576_p2 = scmp.lt.s32.totalorder %s54_s10, %s54_s10 }
  0x26   :  { %p572_p1 = scmp.ne.s32.totalorder %s54_s10, %s571_s11  ;;  %p577_p3 = scmp.lt.s32.totalorder %s571_s11, %s571_s11 }
  0x28   :  { %p578_p4 = por %p577_p3, %p576_p2 }
  0x2a   :  { %p579_p5 = pnand %p578_p4, %p572_p1 }
  0x2c   :  { %582 = shalt.err (!%p579_p5)
}
  0x2d   :  { %59 = dma.hbm_to_vmem [thread:$0]  %s710_s3, 1024, %s54_s10, [#allocation9], %s612_s21, %s612_s21, %s613_s22  }
  0x2e   :  { %603 = dma.done.wait [#allocation3], 128  }
  0x2f   :  { %604 = vsyncadd [#allocation3], 4294967168 }
  0x30   :  { %605 = dma.done.wait [#allocation6], 1280  }
  0x31   :  { %606 = vsyncadd [#allocation6], 4294966016 }
  0x32   :  { %607 = dma.done.wait [#allocation9], 1024  }
  0x33   :  { %608 = vsyncadd [#allocation9], 4294966272  ;;  %v617_v0 = vmov 0.0   ;;  %vm618_vm0 = vmmov 0   ;;  %vm103_vm1 = vcmask 1046528   ;;  %v486_v2 = vld [vmem:[#allocation5] sm:$0xff]  }
  0x34   :  { %428 = vmatprep.subr.bf16.mxu0 %v617_v0  ;;  %432 = vmatprep.mubr.msk.bf16.mxu0 %vm618_vm0, %v617_v0  ;;  %v485_v1 = vld [vmem:[#allocation5 + $0x8] sm:$0x7f]   ;;  %v78_v4 = vld [vmem:[#allocation2] sm:$0xff]  ;;  %v488_v6 = vld [vmem:[#allocation7 + $0x30] sm:$0xff]   ;;  %vm99_vm2 = vcmask 244736   ;;  %s619_s17 = smov [#allocation10]  }
  0x35   :  { %436 = vmatprep.subr.bf16.mxu1 %v617_v0  ;;  %452 = vmatprep.mubr.msk.bf16.mxu1 %vm618_vm0, %v617_v0  ;;  %v105_v3 = vsel %vm103_vm1, %v485_v1, 0  ;;  %v487_v5 = vld [vmem:[#allocation7 + $0x38] sm:$0xff]   ;;  %v79_v7 = vpack.c.bf16 %v78_v4, %v78_v4  ;;  %v489_v8 = vld [vmem:[#allocation7 + $0x28] sm:$0xff]   ;;  %v490_v9 = vld [vmem:[#allocation7 + $0x20] sm:$0xff]   ;;  %s374_s18 = sshll.u32 %s619_s17, 4  ;;  %s375_s18 = int_to_ptr.vmem [resolvable:$true] %s374_s18 }
  0x36   :  { %429 = vmatpush3.bf16.msra.mxu0 %v105_v3  ;;  %437 = vmatpush3.bf16.msra.mxu1 %v487_v5  ;;  %v491_v10 = vld [vmem:[#allocation7 + $0x18] sm:$0xff]   ;;  %v492_v11 = vld [vmem:[#allocation7 + $0x10] sm:$0xff]   ;;  %v493_v12 = vld [vmem:[#allocation7 + $0x8] sm:$0xff]   ;;  %s583_s19 = scalar_lea.vmem %s375_s18, 128  ;;  %p588_p7 = scmp.lt.s32.totalorder %s375_s18, %s375_s18 }
  0x37   :  { %430 = vmatprep.subr.bf16.mxu0 %v617_v0  ;;  %438 = vmatprep.subr.bf16.mxu1 %v617_v0  ;;  %v494_v13 = vld [vmem:[#allocation7] sm:$0xff]   ;;  %v495_v14 = vld [vmem:[#allocation8 + $0x38] sm:$0xff]   ;;  %v496_v15 = vld [vmem:[#allocation8 + $0x30] sm:$0xff]   ;;  %p584_p6 = scmp.ne.s32.totalorder %s375_s18, %s583_s19  ;;  %p589_p8 = scmp.lt.s32.totalorder %s583_s19, %s583_s19 }
  0x38   :  { %v497_v16 = vld [vmem:[#allocation8 + $0x28] sm:$0xff]   ;;  %v498_v17 = vld [vmem:[#allocation8 + $0x20] sm:$0xff]   ;;  %v499_v18 = vld [vmem:[#allocation8 + $0x18] sm:$0xff]  }
  0x39   :  { %v500_v19 = vld [vmem:[#allocation8 + $0x10] sm:$0xff]   ;;  %v385_v20 = vld [vmem:[%s711_s4] ss:$0 sm:$0xff]  ;;  %v502_v29 = vld [vmem:[#allocation8] sm:$0xff]   ;;  %p590_p9 = por %p589_p8, %p588_p7 }
  0x3a   :  { %431 = vmatpush3.bf16.msra.mxu0 %v486_v2  ;;  %439 = vmatpush3.bf16.msra.mxu1 %v488_v6  ;;  %v501_v28 = vld [vmem:[#allocation8 + $0x8] sm:$0xff]  }
  0x3b   :  { %456 = vmatprep.subr.bf16.mxu0 %v617_v0  ;;  %440 = vmatprep.subr.bf16.mxu1 %v617_v0  ;;  %v389_v30 = vld [vmem:[%s711_s4 + $0x1] ss:$0 sm:$0xff]  ;;  %v398_v38 = vld [vmem:[%s711_s4 + $0x2] ss:$0 sm:$0xff]  ;;  %p591_p10 = pnand %p590_p9, %p584_p6 }
  0x3d   :  { %433 = vmatmul.mubr.msk.bf16.vlgmr.msra.gmra.mxu0 %vm99_vm2, %v79_v7 }
  0x3e   :  { %472 = vmatprep.mubr.msk.bf16.mxu0 %vm618_vm0, %v617_v0  ;;  %441 = vmatpush3.bf16.msra.mxu1 %v489_v8 }
  0x3f   :  { %442 = vmatprep.subr.bf16.mxu1 %v617_v0  ;;  %457 = vmatpush3.bf16.msra.mxu0 %v495_v14 }
  0x40   :  { %458 = vmatprep.subr.bf16.mxu0 %v617_v0 }
  0x42   :  { %443 = vmatpush3.bf16.msra.mxu1 %v490_v9 }
  0x43   :  { %444 = vmatprep.subr.bf16.mxu1 %v617_v0  ;;  %459 = vmatpush3.bf16.msra.mxu0 %v496_v15 }
  0x44   :  { %460 = vmatprep.subr.bf16.mxu0 %v617_v0 }
  0x46   :  { %445 = vmatpush3.bf16.msra.mxu1 %v491_v10 }
  0x47   :  { %446 = vmatprep.subr.bf16.mxu1 %v617_v0  ;;  %461 = vmatpush3.bf16.msra.mxu0 %v497_v16 }
  0x48   :  { %462 = vmatprep.subr.bf16.mxu0 %v617_v0 }
  0x4a   :  { %447 = vmatpush3.bf16.msra.mxu1 %v492_v11 }
  0x4b   :  { %448 = vmatprep.subr.bf16.mxu1 %v617_v0  ;;  %463 = vmatpush3.bf16.msra.mxu0 %v498_v17 }
  0x4c   :  { %464 = vmatprep.subr.bf16.mxu0 %v617_v0 }
  0x4e   :  { %449 = vmatpush3.bf16.msra.mxu1 %v493_v12 }
  0x4f   :  { %450 = vmatprep.subr.bf16.mxu1 %v617_v0  ;;  %465 = vmatpush3.bf16.msra.mxu0 %v499_v18 }
  0x50   :  { %466 = vmatprep.subr.bf16.mxu0 %v617_v0 }
  0x52   :  { %451 = vmatpush3.bf16.msra.mxu1 %v494_v13 }
  0x53   :  { %467 = vmatpush3.bf16.msra.mxu0 %v500_v19 }
  0x54   :  { %468 = vmatprep.subr.bf16.mxu0 %v617_v0 }
  0x57   :  { %469 = vmatpush3.bf16.msra.mxu0 %v501_v28 }
  0x58   :  { %470 = vmatprep.subr.bf16.mxu0 %v617_v0 }
  0x5b   :  { %471 = vmatpush3.bf16.msra.mxu0 %v502_v29 }
  0xfd   :  { %v141_v21 = vpop.f32.mrf.mxu0 }
  0xfe   :  { %v142_v22 = vadd.f32 %v385_v20, %v141_v21 }
  0xff   :  { %v434_v23 = vpop.f32.mrf.mxu0 }
 0x100   :  { %v147_v24 = vmax.f32 %v142_v22, 0.0 }
 0x101   :  { %v144_v25 = vpop.f32.mrf.mxu0 }
 0x102   :  { %v148_v26 = vpack.c.bf16 %v147_v24, %v147_v24 }
 0x103   :  { %v435_v27 = vpop.f32.mrf.mxu0 }
 0x104   :  { %453 = vmatmul.mubr.bf16.vlgmr.msra.gmra.mxu1 %v148_v26 }
 0x1c4   :  { %v251_v31 = vpop.f32.mrf.mxu1 }
 0x1c5   :  { %v252_v32 = vadd.f32 %v389_v30, %v251_v31 }
 0x1c6   :  { %v454_v33 = vpop.f32.mrf.mxu1 }
 0x1c7   :  { %v257_v34 = vmax.f32 %v252_v32, 0.0 }
 0x1c8   :  { %v254_v35 = vpop.f32.mrf.mxu1 }
 0x1c9   :  { %v258_v36 = vpack.c.bf16 %v257_v34, %v257_v34 }
 0x1ca   :  { %v455_v37 = vpop.f32.mrf.mxu1 }
 0x1cb   :  { %473 = vmatmul.mubr.bf16.vlgmr.msra.gmra.mxu0 %v258_v36 }
 0x28b   :  { %v361_v39 = vpop.f32.mrf.mxu0 }
 0x28c   :  { %v362_v40 = vadd.f32 %v398_v38, %v361_v39 }
 0x28d   :  { %v474_v41 = vpop.f32.mrf.mxu0 }
 0x28e   :  { %367 = vst [vmem:[#allocation10] sm:$0xff] %v362_v40 }
 0x28f   :  { %v364_v42 = vpop.f32.mrf.mxu0 }
 0x290   :  { %594 = shalt.err (!%p591_p10)
}
 0x291   :  { %377 = dma.vmem_to_hbm [thread:$0]  %s375_s18, 128, %s712_s5, [#allocation4]   ;;  %v475_v43 = vpop.f32.mrf.mxu0 }
 0x292   :  { %609 = dma.done.wait [#allocation4], 128  }
 0x293   :  { %610 = vsyncadd [#allocation4], 4294967168 }
 0x294   :  { %381 = vsyncpa [#allocation3], 1 }
 0x295   :  { %382 = vsyncpa [#allocation6], 1 }
 0x296   :  { %383 = vsyncpa [#allocation9], 1 }
 0x297   :  { %384 = vsyncpa [#allocation4], 1 }

</bundles_post_ra>
